<compile_context>
chip_gen: v5e
topology: v5e:2x2
jax: 0.10.0
libtpu: 0.0.40
codegen_flags: <defaults>
</compile_context>

<pallas_src>
import functools

import jax
import jax.numpy as jnp
from jax.experimental import pallas as pl
from jax.experimental.pallas import tpu as pltpu


_LANE = 128                      # lane width; embedding dim padded to this
_BASE = 512                      # node-count padding granularity
_TM_MAX = 512                    # max output-row tile
_TK_MAX = 2048                   # max reduction tile
_X_RESIDENT_BYTES = 8 * 1024 * 1024   # keep x VMEM-resident below this size


def _round_up(x, m):
    return ((x + m - 1) // m) * m


def _choose_tiles(np_nodes):
    """Pick (tm, tk) that divide np_nodes; keep >= 2 row tiles (v7x megacore)."""
    tm = _TM_MAX if np_nodes >= 2 * _TM_MAX else np_nodes // 2
    tk = _BASE
    for cand in (_TK_MAX, 1024, _BASE):
        if np_nodes % cand == 0:
            tk = cand
            break
    return tm, tk


# ----------------------------------------------------------------------------
# Pallas kernel: one propagation step  o = (scale * A_int8) @ x.
# ----------------------------------------------------------------------------
def _propagate(adj_i8, adj_scale, x_bf16, *, tm, tk, x_resident):
    np_nodes = adj_i8.shape[0]
    dp = x_bf16.shape[1]
    grid = (np_nodes // tm, np_nodes // tk)

    def kernel(scale_ref, a_ref, x_ref, o_ref, acc_ref):
        k = pl.program_id(1)

        @pl.when(k == 0)
        def _init():
            acc_ref[...] = jnp.zeros_like(acc_ref)

        if x_resident:
            off = pl.multiple_of(k * tk, tk)
            xk = x_ref[pl.ds(off, tk), :]
        else:
            xk = x_ref[...]

        # A streams from HBM as int8 (1 B/elem); up-cast to bf16 in VMEM only.
        acc_ref[...] += jnp.dot(a_ref[...].astype(jnp.bfloat16), xk,
                                preferred_element_type=jnp.float32)

        @pl.when(k == pl.num_programs(1) - 1)
        def _finalize():
            o_ref[...] = (acc_ref[...] * scale_ref[0]).astype(o_ref.dtype)

    if x_resident:
        # Constant block index -> DMA'd once, stays VMEM-resident for the grid.
        x_spec = pl.BlockSpec((np_nodes, dp), lambda i, k: (0, 0))
        x_bytes = np_nodes * dp * 2
    else:
        x_spec = pl.BlockSpec((tk, dp), lambda i, k: (k, 0))
        x_bytes = (np_nodes // tm) * np_nodes * dp * 2   # re-stream factor

    cost = pl.CostEstimate(
        flops=2 * np_nodes * np_nodes * dp,
        transcendentals=0,
        bytes_accessed=(np_nodes * np_nodes * 1      # A (int8)
                        + x_bytes                    # x (bf16)
                        + np_nodes * dp * 2))        # out (bf16)

    return pl.pallas_call(
        kernel,
        out_shape=jax.ShapeDtypeStruct((np_nodes, dp), jnp.bfloat16),
        grid_spec=pltpu.PrefetchScalarGridSpec(
            num_scalar_prefetch=0,
            grid=grid,
            in_specs=[
                pl.BlockSpec(memory_space=pltpu.MemorySpace.SMEM),  # scale (1,)
                pl.BlockSpec((tm, tk), lambda i, k: (i, k)),        # A int8 tile
                x_spec,                                             # x
            ],
            out_specs=pl.BlockSpec((tm, dp), lambda i, k: (i, 0)),
            scratch_shapes=[pltpu.VMEM((tm, dp), jnp.float32)],     # f32 acc
        ),
        compiler_params=pltpu.CompilerParams(
            dimension_semantics=("parallel", "arbitrary"),
            vmem_limit_bytes=48 * 1024 * 1024),
        cost_estimate=cost,
    )(adj_scale, adj_i8, x_bf16)


# ----------------------------------------------------------------------------
# Graph preprocessing (build ONCE per graph, reuse across forward passes).
# ----------------------------------------------------------------------------
def build_normalized_adjacency(edge_index, n_nodes, edge_weight=None):
    """Dense sym-normalized adjacency, padded, int8-quantized with one scale."""
    np_nodes = _round_up(max(n_nodes, _BASE), _BASE)
    row = edge_index[0]
    col = edge_index[1]

    # degree(col, N); deg^{-1/2} with inf -> 0  (matches PyG `degree` semantics)
    deg = jnp.zeros((n_nodes,), jnp.float32).at[col].add(1.0)
    deg_inv_sqrt = jnp.where(deg > 0, jax.lax.rsqrt(deg), 0.0)
    norm = deg_inv_sqrt[row] * deg_inv_sqrt[col]
    if edge_weight is not None:
        norm = norm * edge_weight.astype(jnp.float32)

    # out[col] += norm * x[row]  <=>  out = A @ x,  A[c, r] = sum_e norm_e.
    adj = jnp.zeros((np_nodes, np_nodes), jnp.float32).at[col, row].add(norm)

    amax = jnp.max(jnp.abs(adj))
    scale = jnp.where(amax > 0, amax / 127.0, 1.0).astype(jnp.float32)
    adj_i8 = jnp.clip(jnp.round(adj / scale), -127.0, 127.0).astype(jnp.int8)
    return adj_i8, scale.reshape((1,))


# ----------------------------------------------------------------------------
# Forward pass (jitted): K propagations + mean over the (K+1) embeddings.
# ----------------------------------------------------------------------------
@functools.partial(jax.jit, static_argnames=("num_layers",))
def lightgcn_forward(user_emb, item_emb, adj_i8, adj_scale, num_layers=3):
    num_users = user_emb.shape[0]
    all_emb = jnp.concatenate([user_emb, item_emb], axis=0).astype(jnp.float32)
    n_nodes, emb_dim = all_emb.shape
    np_nodes = adj_i8.shape[0]
    dp = _round_up(max(emb_dim, _LANE), _LANE)

    tm, tk = _choose_tiles(np_nodes)
    x_resident = (np_nodes * dp * 2) <= _X_RESIDENT_BYTES

    x0 = jnp.zeros((np_nodes, dp), jnp.float32).at[:n_nodes, :emb_dim].set(all_emb)
    acc = x0                               # f32 running sum (layer 0)
    cur = x0.astype(jnp.bfloat16)          # bf16 layer embedding fed to kernel
    for _ in range(num_layers):            # static unroll; num_layers is small
        cur = _propagate(adj_i8, adj_scale, cur,
                         tm=tm, tk=tk, x_resident=x_resident)
        acc = acc + cur.astype(jnp.float32)

    final = (acc / float(num_layers + 1))[:n_nodes, :emb_dim]
    return final[:num_users], final[num_users:]


# ----------------------------------------------------------------------------
# References for the self-test.
# ----------------------------------------------------------------------------
def lightgcn_reference_f32(user_emb, item_emb, edge_index, num_layers=3):
    """Exact f32 scatter-based reference mirroring the PyTorch module."""
    num_users = user_emb.shape[0]
    all_emb = jnp.concatenate([user_emb, item_emb], axis=0).astype(jnp.float32)
    n_nodes = all_emb.shape[0]
    row, col = edge_index[0], edge_index[1]
    deg = jnp.zeros((n_nodes,), jnp.float32).at[col].add(1.0)
    deg_inv_sqrt = jnp.where(deg > 0, jax.lax.rsqrt(deg), 0.0)
    norm = deg_inv_sqrt[row] * deg_inv_sqrt[col]
    embs = [all_emb]
    x = all_emb
    for _ in range(num_layers):
        x = jnp.zeros_like(x).at[col].add(x[row] * norm[:, None])
        embs.append(x)
    final = jnp.stack(embs, axis=1).mean(axis=1)
    return final[:num_users], final[num_users:]


def lightgcn_reference_quant(user_emb, item_emb, adj_i8, adj_scale, num_layers=3):
    """Dense reference with the SAME int8/bf16 quantization as the kernel."""
    num_users = user_emb.shape[0]
    all_emb = jnp.concatenate([user_emb, item_emb], axis=0).astype(jnp.float32)
    n_nodes, emb_dim = all_emb.shape
    np_nodes = adj_i8.shape[0]
    dp = _round_up(max(emb_dim, _LANE), _LANE)
    x0 = jnp.zeros((np_nodes, dp), jnp.float32).at[:n_nodes, :emb_dim].set(all_emb)
    a_bf16 = adj_i8.astype(jnp.bfloat16)
    acc = x0
    cur = x0.astype(jnp.bfloat16)
    for _ in range(num_layers):
        y = jnp.dot(a_bf16, cur, preferred_element_type=jnp.float32) * adj_scale[0]
        cur = y.astype(jnp.bfloat16)
        acc = acc + cur.astype(jnp.float32)
    final = (acc / float(num_layers + 1))[:n_nodes, :emb_dim]
    return final[:num_users], final[num_users:]


if __name__ == "__main__":
    num_users = 192
    num_items = 200
    embedding_dim = 12
    num_layers = 3

    key = jax.random.PRNGKey(0)
    ku, ki = jax.random.split(key)
    # nn.init.normal_(std=0.1)
    user_emb = 0.1 * jax.random.normal(ku, (num_users, embedding_dim), jnp.float32)
    item_emb = 0.1 * jax.random.normal(ki, (num_items, embedding_dim), jnp.float32)

    # Deterministic bipartite interaction graph, both edge directions
    # (user <-> item), item nodes offset by num_users.
    users = jnp.arange(num_users, dtype=jnp.int32)
    items_a = users % num_items
    items_b = (3 * users + 7) % num_items
    u_src = jnp.concatenate([users, users])
    i_dst = jnp.concatenate([items_a, items_b]) + num_users
    row = jnp.concatenate([u_src, i_dst])
    col = jnp.concatenate([i_dst, u_src])
    edge_index = jnp.stack([row, col], axis=0)  # (2, E)

    n_nodes = num_users + num_items

    # Build the normalized adjacency once (amortized across forward passes).
    adj_i8, adj_scale = build_normalized_adjacency(edge_index, n_nodes)

    user_final, item_final = lightgcn_forward(
        user_emb, item_emb, adj_i8, adj_scale, num_layers=num_layers)
    jax.block_until_ready((user_final, item_final))

    assert user_final.shape == (num_users, embedding_dim)
    assert item_final.shape == (num_items, embedding_dim)

    # Tight check vs a dense JAX reference using the identical quantization.
    ref_u_q, ref_i_q = lightgcn_reference_quant(
        user_emb, item_emb, adj_i8, adj_scale, num_layers=num_layers)
    assert jnp.allclose(user_final, ref_u_q, atol=1e-4, rtol=1e-4)
    assert jnp.allclose(item_final, ref_i_q, atol=1e-4, rtol=1e-4)

    # Loose check vs the exact f32 scatter reference (int8 A + bf16 x cost
    # ~0.5% relative per propagation layer, compounding over num_layers).
    ref_u_f32, ref_i_f32 = lightgcn_reference_f32(
        user_emb, item_emb, edge_index, num_layers=num_layers)
    assert jnp.allclose(user_final, ref_u_f32, atol=1e-2, rtol=5e-2)
    assert jnp.allclose(item_final, ref_i_f32, atol=1e-2, rtol=5e-2)

    print("KERNEL_OK")
</pallas_src>

<mosaic_0001>
module attributes {stable_mosaic.version = 11 : i64} {
  func.func @kernel(%arg0: i32, %arg1: i32, %arg2: memref<1xf32, #tpu.memory_space<smem>>, %arg3: memref<256x512xi8, #tpu.memory_space<vmem>>, %arg4: memref<512x128xbf16, #tpu.memory_space<vmem>>, %arg5: memref<256x128xbf16, #tpu.memory_space<vmem>>, %arg6: memref<256x128xf32, #tpu.memory_space<vmem>>) attributes {dimension_semantics = [#tpu.dimension_semantics<parallel>, #tpu.dimension_semantics<arbitrary>], iteration_bounds = array<i64: 2, 1>, scalar_prefetch = 0 : i64, scratch_operands = 1 : i64, tpu.core_type = #tpu.core_type<tc>, window_params = [{transform_indices = @transform_0, window_bounds = array<i64: 1>}, {transform_indices = @transform_1, window_bounds = array<i64: 256, 512>}, {pipeline_mode = #tpu.pipeline_mode<synchronous>, transform_indices = @transform_2, window_bounds = array<i64: 512, 128>}, {transform_indices = @transform_3, window_bounds = array<i64: 256, 128>}]} {
    %c0_i32 = arith.constant 0 : i32
    %0 = arith.cmpi eq, %arg1, %c0_i32 : i32
    %1 = arith.extui %0 : i1 to i32
    %c0_i32_0 = arith.constant 0 : i32
    %2 = arith.cmpi ne, %1, %c0_i32_0 : i32
    scf.if %2 {
      %cst_9 = arith.constant 0.000000e+00 : f32
      %16 = vector.broadcast %cst_9 : f32 to vector<256x128xf32>
      %c0_10 = arith.constant 0 : index
      %c0_11 = arith.constant 0 : index
      %17 = vector.load %arg6[%c0_10, %c0_11] : memref<256x128xf32, #tpu.memory_space<vmem>>, vector<256x128xf32>
      tpu.vector_store %arg6[%c0_10, %c0_11], %16 {strides = array<i32>} : memref<256x128xf32, #tpu.memory_space<vmem>>, vector<256x128xf32>,
    } else {
    }
    %c512_i32 = arith.constant 512 : i32
    %3 = arith.muli %arg1, %c512_i32 : i32
    %4 = tpu.assume_multiple %3, 512 : i32
    %5 = arith.index_cast %4 : i32 to index
    %c0 = arith.constant 0 : index
    %6 = vector.load %arg4[%5, %c0] : memref<512x128xbf16, #tpu.memory_space<vmem>>, vector<512x128xbf16>
    %c0_1 = arith.constant 0 : index
    %c0_2 = arith.constant 0 : index
    %7 = vector.load %arg6[%c0_1, %c0_2] : memref<256x128xf32, #tpu.memory_space<vmem>>, vector<256x128xf32>
    %c0_3 = arith.constant 0 : index
    %c0_4 = arith.constant 0 : index
    %8 = vector.load %arg3[%c0_3, %c0_4] : memref<256x512xi8, #tpu.memory_space<vmem>>, vector<256x512xi8>
    %9 = arith.sitofp %8 : vector<256x512xi8> to vector<256x512xbf16>
    %cst = arith.constant dense<0.000000e+00> : vector<256x128xf32>
    %10 = tpu.matmul %9, %6, %cst {dimension_numbers = #tpu.dot_dimension_numbers<[1], [0], [0], [1], [0, 0, 1, 1], [], []>} : vector<256x512xbf16>, vector<512x128xbf16>, vector<256x128xf32> -> vector<256x128xf32>
    %11 = arith.addf %7, %10 : vector<256x128xf32>
    %c0_5 = arith.constant 0 : index
    %c0_6 = arith.constant 0 : index
    %12 = vector.load %arg6[%c0_5, %c0_6] : memref<256x128xf32, #tpu.memory_space<vmem>>, vector<256x128xf32>
    tpu.vector_store %arg6[%c0_5, %c0_6], %11 {strides = array<i32>} : memref<256x128xf32, #tpu.memory_space<vmem>>, vector<256x128xf32>,
    %c0_i32_7 = arith.constant 0 : i32
    %13 = arith.cmpi eq, %arg1, %c0_i32_7 : i32
    %14 = arith.extui %13 : i1 to i32
    %c0_i32_8 = arith.constant 0 : i32
    %15 = arith.cmpi ne, %14, %c0_i32_8 : i32
    scf.if %15 {
      %c0_9 = arith.constant 0 : index
      %c0_10 = arith.constant 0 : index
      %16 = vector.load %arg6[%c0_9, %c0_10] : memref<256x128xf32, #tpu.memory_space<vmem>>, vector<256x128xf32>
      %c0_11 = arith.constant 0 : index
      %17 = memref.load %arg2[%c0_11] : memref<1xf32, #tpu.memory_space<smem>>
      %18 = vector.broadcast %17 : f32 to vector<256x128xf32>
      %19 = arith.mulf %16, %18 : vector<256x128xf32>
      %20 = arith.truncf %19 : vector<256x128xf32> to vector<256x128xbf16>
      %c0_12 = arith.constant 0 : index
      %c0_13 = arith.constant 0 : index
      %21 = vector.load %arg5[%c0_12, %c0_13] : memref<256x128xbf16, #tpu.memory_space<vmem>>, vector<256x128xbf16>
      tpu.vector_store %arg5[%c0_12, %c0_13], %20 {strides = array<i32>} : memref<256x128xbf16, #tpu.memory_space<vmem>>, vector<256x128xbf16>,
    } else {
    }
    return
  }
  func.func @transform_0(%arg0: i32, %arg1: i32) -> i32 {
    %c0_i32 = arith.constant 0 : i32
    %c0_i32_0 = arith.constant 0 : i32
    return %c0_i32 : i32
  }
  func.func @transform_1(%arg0: i32, %arg1: i32) -> (i32, i32) {
    %c0_i32 = arith.constant 0 : i32
    return %arg0, %arg1 : i32, i32
  }
  func.func @transform_2(%arg0: i32, %arg1: i32) -> (i32, i32) {
    %c0_i32 = arith.constant 0 : i32
    %c0_i32_0 = arith.constant 0 : i32
    %c0_i32_1 = arith.constant 0 : i32
    return %c0_i32, %c0_i32_0 : i32, i32
  }
  func.func @transform_3(%arg0: i32, %arg1: i32) -> (i32, i32) {
    %c0_i32 = arith.constant 0 : i32
    %c0_i32_0 = arith.constant 0 : i32
    return %arg0, %c0_i32 : i32, i32
  }
}

</mosaic_0001>

<bundles_post_ra>
// kernel: lightgcn_forward.3
= control target key start
LH: loop header
LB: loop body
LE: loop exit
PB: predicated region body
PF: predicated region fallthrough
CT: control target
= control target key end

     0   :  { %s1852_s14 = smov 0   ;;  %s1854_s15 = smov 0   ;;  %s2143_s0 = inlined_call_operand.<no memory space> [shape: f32[1], index: 0, kind: input, shape index: {}]   ;;  %s2144_s1 = inlined_call_operand.vmem [shape: s8[512,512], index: 1, kind: input, shape index: {}]   ;;  %s2145_s2 = inlined_call_operand.vmem [shape: bf16[512,128], index: 2, kind: input, shape index: {}]   ;;  %s2146_s3 = inlined_call_operand.vmem [shape: bf16[512,128], index: 3, kind: output, shape index: {}]  }
   0x1   :  { %8 = sst [smem:[#allocation3]] %s2143_s0  ;;  %s1856_s16 = smov 0  }
   0x2 LB: > { %s26_s0 = sadd.s32 1, %s1823_s15  ;;  %p1517_p0 = scmp.ge.s32.totalorder %s1827_s16, 1  ;;  %s1827_s16 = sphi %s1856_s16, %s14_s16   ;;  %s1823_s15 = sphi %s1854_s15, %s2148_s15   ;;  %s1819_s14 = sphi %s1852_s14, %s2147_s14  }
   0x3   : > { %p28_p1 = scmp.ge.s32.totalorder %s26_s0, 2  ;;  %p159_p2 = scmp.lt.s32.totalorder %s1827_s16, 3 }
   0x5   : > { %s2150_s0 = smov (%p28_p1, %s26_s0), 0  ;;  %p160_p3 = pnand %p1517_p0, %p159_p2 }
   0x6   : > { %s1518_s25 = sshll.u32 (!%p160_p3), %s1819_s14, 3  ;;  %s1521_s12 = sshll.u32 (!%p160_p3), %s1819_s14, 5 }
   0x7   : > { %163 = sbr.rel (%p160_p3) target bundleno = 435 (0x1b3), region = 32  ;;  %p190_p4 = scmp.lt.s32.totalorder (!%p160_p3), %s1518_s25, 15 }
   0x8   : > { %s1342_s13 = sld [smem:[#allocation3]] (!%p160_p3)  ;;  %p201_p5 = scmp.lt.s32.totalorder (!%p160_p3), %s1521_s12, 63 }
   0xc   : > { %v1661_v0 = vld [vmem:[%s2145_s2 + $0x38] sm:$0xff]  ;;  %v1660_v4 = vld [vmem:[%s2145_s2 + $0x30] sm:$0xff]  ;;  %v1659_v8 = vld [vmem:[%s2145_s2 + $0x28] sm:$0xff]  ;;  %s2152_s25 = smov (!%p190_p4, %s1518_s25), 15  ;;  %s2154_s12 = smov (!%p201_p5, %s1521_s12), 63 }
   0xd   : > { %v1669_v1 = vld [vmem:[%s2145_s2 + $0x78] sm:$0xff]  ;;  %887 = vmatpush.bf16.msra.mxu0 %v1661_v0  ;;  %v1668_v5 = vld [vmem:[%s2145_s2 + $0x70] sm:$0xff]  ;;  %v1667_v9 = vld [vmem:[%s2145_s2 + $0x68] sm:$0xff]  ;;  %s1653_s27 = sshll.u32 %s2152_s25, 5  ;;  %s1522_s14 = sshll.u32 %s2154_s12, 2 }
   0xe   : > { %v1677_v2 = vld [vmem:[%s2145_s2 + $0xb8] sm:$0xff]  ;;  %976 = vmatpush.bf16.msra.mxu1 %v1669_v1  ;;  %v1676_v6 = vld [vmem:[%s2145_s2 + $0xb0] sm:$0xff]  ;;  %v1675_v10 = vld [vmem:[%s2145_s2 + $0xa8] sm:$0xff]  ;;  %s1936_s10 = scalar_lea.vmem %s2144_s1, %s1653_s27  ;;  %s2011_s19 = scalar_lea.vmem %s2146_s3, %s1522_s14 }
   0xf   : > { %v1685_v3 = vld [vmem:[%s2145_s2 + $0xf8] sm:$0xff]  ;;  %1065 = vmatpush.bf16.msra.mxu2 %v1677_v2  ;;  %v1684_v7 = vld [vmem:[%s2145_s2 + $0xf0] sm:$0xff]  ;;  %v1683_v11 = vld [vmem:[%s2145_s2 + $0xe8] sm:$0xff] }
  0x10   : > { %1154 = vmatpush.bf16.msra.mxu3 %v1685_v3  ;;  %v1658_v12 = vld [vmem:[%s2145_s2 + $0x20] sm:$0xff]  ;;  %v1657_v16 = vld [vmem:[%s2145_s2 + $0x18] sm:$0xff]  ;;  %v1656_v20 = vld [vmem:[%s2145_s2 + $0x10] sm:$0xff] }
  0x11   : > { %888 = vmatpush.bf16.msra.mxu0 %v1660_v4  ;;  %v1666_v13 = vld [vmem:[%s2145_s2 + $0x60] sm:$0xff]  ;;  %v1665_v17 = vld [vmem:[%s2145_s2 + $0x58] sm:$0xff]  ;;  %v1664_v21 = vld [vmem:[%s2145_s2 + $0x50] sm:$0xff] }
  0x12   : > { %977 = vmatpush.bf16.msra.mxu1 %v1668_v5  ;;  %v1674_v14 = vld [vmem:[%s2145_s2 + $0xa0] sm:$0xff]  ;;  %v1673_v18 = vld [vmem:[%s2145_s2 + $0x98] sm:$0xff]  ;;  %v1672_v22 = vld [vmem:[%s2145_s2 + $0x90] sm:$0xff] }
  0x13   : > { %1066 = vmatpush.bf16.msra.mxu2 %v1676_v6  ;;  %v1682_v15 = vld [vmem:[%s2145_s2 + $0xe0] sm:$0xff]  ;;  %v1681_v19 = vld [vmem:[%s2145_s2 + $0xd8] sm:$0xff]  ;;  %v344_v24 = vld [vmem:[%s1936_s10 + $0x8] sm:$0xff] }
  0x14   : > { %1155 = vmatpush.bf16.msra.mxu3 %v1684_v7  ;;  %v343_v23 = vld [vmem:[%s1936_s10] sm:$0xff]  ;;  %v1680_v25 = vld [vmem:[%s2145_s2 + $0xd0] sm:$0xff]  ;;  %v346_v27 = vld [vmem:[%s1936_s10 + $0x18] sm:$0xff]  ;;  %v376_v30 = vunpack.c.0.s8 %v344_v24  ;;  %v380_v31 = vunpack.c.1.s8 %v344_v24  ;;  %v384_v58 = vunpack.c.2.s8 %v344_v24  ;;  %v388_v59 = vunpack.c.3.s8 %v344_v24 }
  0x15   : > { %889 = vmatpush.bf16.msra.mxu0 %v1659_v8  ;;  %v345_v26 = vld [vmem:[%s1936_s10 + $0x10] sm:$0xff]  ;;  %v375_v28 = vunpack.c.0.s8 %v343_v23  ;;  %v379_v29 = vunpack.c.1.s8 %v343_v23  ;;  %v1655_v32 = vld [vmem:[%s2145_s2 + $0x8] sm:$0xff]  ;;  %v378_v36 = vunpack.c.0.s8 %v346_v27  ;;  %v382_v37 = vunpack.c.1.s8 %v346_v27  ;;  %v1654_v44 = vld [vmem:[%s2145_s2] sm:$0xff] }
  0x16   : > { %978 = vmatpush.bf16.msra.mxu1 %v1667_v9  ;;  %v1663_v33 = vld [vmem:[%s2145_s2 + $0x48] sm:$0xff]  ;;  %v377_v34 = vunpack.c.0.s8 %v345_v26  ;;  %v381_v35 = vunpack.c.1.s8 %v345_v26  ;;  %v504_v42 = vcvt.s32.f32 %v376_v30  ;;  %v508_v43 = vcvt.s32.f32 %v380_v31  ;;  %v1662_v45 = vld [vmem:[%s2145_s2 + $0x40] sm:$0xff] }
  0x17   : > { %1067 = vmatpush.bf16.msra.mxu2 %v1675_v10  ;;  %v1671_v38 = vld [vmem:[%s2145_s2 + $0x88] sm:$0xff]  ;;  %v503_v40 = vcvt.s32.f32 %v375_v28  ;;  %v507_v41 = vcvt.s32.f32 %v379_v29  ;;  %v506_v48 = vcvt.s32.f32 %v378_v36  ;;  %v510_v49 = vcvt.s32.f32 %v382_v37  ;;  %v1670_v50 = vld [vmem:[%s2145_s2 + $0x80] sm:$0xff] }
  0x18   : > { %1156 = vmatpush.bf16.msra.mxu3 %v1683_v11  ;;  %v1679_v39 = vld [vmem:[%s2145_s2 + $0xc8] sm:$0xff]  ;;  %v505_v46 = vcvt.s32.f32 %v377_v34  ;;  %v509_v47 = vcvt.s32.f32 %v381_v35  ;;  %v1678_v51 = vld [vmem:[%s2145_s2 + $0xc0] sm:$0xff]  ;;  %v632_v53 = vpack.c.bf16 %v508_v43, %v504_v42  ;;  %v383_v56 = vunpack.c.2.s8 %v343_v23 }
  0x19   : > { %890 = vmatpush.bf16.msra.mxu0 %v1658_v12  ;;  %v631_v52 = vpack.c.bf16 %v507_v41, %v503_v40  ;;  %v634_v55 = vpack.c.bf16 %v510_v49, %v506_v48  ;;  %v387_v57 = vunpack.c.3.s8 %v343_v23  ;;  %v385_v60 = vunpack.c.2.s8 %v345_v26  ;;  %v347_v12 = vld [vmem:[%s1936_s10 + $0x20] sm:$0xff] }
  0x1a   : > { %979 = vmatpush.bf16.msra.mxu1 %v1666_v13  ;;  %v633_v54 = vpack.c.bf16 %v509_v47, %v505_v46  ;;  %v389_v61 = vunpack.c.3.s8 %v345_v26  ;;  %v386_v62 = vunpack.c.2.s8 %v346_v27  ;;  %v390_v63 = vunpack.c.3.s8 %v346_v27  ;;  %v348_v13 = vld [vmem:[%s1936_s10 + $0x28] sm:$0xff] }
  0x1b   : > { %1068 = vmatpush.bf16.msra.mxu2 %v1674_v14  ;;  %v511_v0 = vcvt.s32.f32 %v383_v56  ;;  %v515_v1 = vcvt.s32.f32 %v387_v57  ;;  %v512_v2 = vcvt.s32.f32 %v384_v58  ;;  %v516_v3 = vcvt.s32.f32 %v388_v59  ;;  %v349_v14 = vld [vmem:[%s1936_s10 + $0x30] sm:$0xff]  ;;  %v351_v56 = vld [vmem:[%s1936_s10 + $0x40] sm:$0xff]  ;;  %v352_v57 = vld [vmem:[%s1936_s10 + $0x48] sm:$0xff] }
  0x1c   : > { %1157 = vmatpush.bf16.msra.mxu3 %v1682_v15  ;;  %v513_v4 = vcvt.s32.f32 %v385_v60  ;;  %v517_v5 = vcvt.s32.f32 %v389_v61  ;;  %v514_v6 = vcvt.s32.f32 %v386_v62  ;;  %v518_v7 = vcvt.s32.f32 %v390_v63  ;;  %v350_v15 = vld [vmem:[%s1936_s10 + $0x38] sm:$0xff]  ;;  %v353_v58 = vld [vmem:[%s1936_s10 + $0x50] sm:$0xff] }
  0x1d   : > { %891 = vmatpush.bf16.msra.mxu0 %v1657_v16  ;;  %v635_v8 = vpack.c.bf16 %v515_v1, %v511_v0  ;;  %v636_v9 = vpack.c.bf16 %v516_v3, %v512_v2  ;;  %v391_v16 = vunpack.c.0.s8 %v347_v12  ;;  %v398_v23 = vunpack.c.1.s8 %v350_v15  ;;  %v354_v59 = vld [vmem:[%s1936_s10 + $0x58] sm:$0xff] }
  0x1e   : > { %980 = vmatpush.bf16.msra.mxu1 %v1665_v17  ;;  %v637_v10 = vpack.c.bf16 %v517_v5, %v513_v4  ;;  %v638_v11 = vpack.c.bf16 %v518_v7, %v514_v6  ;;  %v395_v17 = vunpack.c.1.s8 %v347_v12  ;;  %v399_v36 = vunpack.c.2.s8 %v347_v12 }
  0x1f   : > { %1069 = vmatpush.bf16.msra.mxu2 %v1673_v18  ;;  %v392_v18 = vunpack.c.0.s8 %v348_v13  ;;  %v519_v24 = vcvt.s32.f32 %v391_v16  ;;  %v526_v31 = vcvt.s32.f32 %v398_v23  ;;  %v403_v37 = vunpack.c.3.s8 %v347_v12 }
  0x20   : > { %1158 = vmatpush.bf16.msra.mxu3 %v1681_v19  ;;  %v396_v19 = vunpack.c.1.s8 %v348_v13  ;;  %v401_v40 = vunpack.c.2.s8 %v349_v14  ;;  %v405_v41 = vunpack.c.3.s8 %v349_v14  ;;  %v402_v42 = vunpack.c.2.s8 %v350_v15 }
  0x21   : > { %892 = vmatpush.bf16.msra.mxu0 %v1656_v20  ;;  %v393_v20 = vunpack.c.0.s8 %v349_v14  ;;  %v520_v26 = vcvt.s32.f32 %v392_v18  ;;  %v406_v43 = vunpack.c.3.s8 %v350_v15  ;;  %v407_v60 = vunpack.c.0.s8 %v351_v56 }
  0x22   : > { %981 = vmatpush.bf16.msra.mxu1 %v1664_v21  ;;  %v397_v21 = vunpack.c.1.s8 %v349_v14  ;;  %v524_v27 = vcvt.s32.f32 %v396_v19  ;;  %v529_v48 = vcvt.s32.f32 %v401_v40  ;;  %v533_v49 = vcvt.s32.f32 %v405_v41 }
  0x23   : > { %1070 = vmatpush.bf16.msra.mxu2 %v1672_v22  ;;  %v394_v22 = vunpack.c.0.s8 %v350_v15  ;;  %v521_v28 = vcvt.s32.f32 %v393_v20  ;;  %v411_v61 = vunpack.c.1.s8 %v351_v56  ;;  %v408_v62 = vunpack.c.0.s8 %v352_v57 }
  0x24   : > { %1159 = vmatpush.bf16.msra.mxu3 %v1680_v25  ;;  %v523_v25 = vcvt.s32.f32 %v395_v17  ;;  %v525_v29 = vcvt.s32.f32 %v397_v21  ;;  %v412_v63 = vunpack.c.1.s8 %v352_v57  ;;  %v409_v0 = vunpack.c.0.s8 %v353_v58 }
  0x25   : > { %893 = vmatpush.bf16.msra.mxu0 %v1655_v32  ;;  %v522_v30 = vcvt.s32.f32 %v394_v22  ;;  %v413_v1 = vunpack.c.1.s8 %v353_v58  ;;  %v410_v2 = vunpack.c.0.s8 %v354_v59  ;;  %v414_v3 = vunpack.c.1.s8 %v354_v59 }
  0x26   : > { %982 = vmatpush.bf16.msra.mxu1 %v1663_v33  ;;  %v639_v32 = vpack.c.bf16 %v523_v25, %v519_v24  ;;  %v640_v33 = vpack.c.bf16 %v524_v27, %v520_v26  ;;  %v641_v34 = vpack.c.bf16 %v525_v29, %v521_v28  ;;  %v535_v4 = vcvt.s32.f32 %v407_v60 }
  0x27   : > { %1071 = vmatpush.bf16.msra.mxu2 %v1671_v38  ;;  %v642_v35 = vpack.c.bf16 %v526_v31, %v522_v30  ;;  %v400_v38 = vunpack.c.2.s8 %v348_v13  ;;  %v539_v5 = vcvt.s32.f32 %v411_v61  ;;  %v536_v6 = vcvt.s32.f32 %v408_v62 }
  0x28   : > { %1160 = vmatpush.bf16.msra.mxu3 %v1679_v39  ;;  %v404_v39 = vunpack.c.3.s8 %v348_v13  ;;  %v540_v7 = vcvt.s32.f32 %v412_v63  ;;  %v415_v16 = vunpack.c.2.s8 %v351_v56  ;;  %v419_v17 = vunpack.c.3.s8 %v351_v56 }
  0x29   : > { %894 = vmatpush.bf16.msra.mxu0 %v1654_v44  ;;  %v527_v44 = vcvt.s32.f32 %v399_v36  ;;  %v528_v46 = vcvt.s32.f32 %v400_v38  ;;  %v647_v12 = vpack.c.bf16 %v539_v5, %v535_v4  ;;  %v416_v18 = vunpack.c.2.s8 %v352_v57  ;;  %v355_v36 = vld [vmem:[%s1936_s10 + $0x60] sm:$0xff]  ;;  %v357_v38 = vld [vmem:[%s1936_s10 + $0x70] sm:$0xff] }
  0x2a   : > { %983 = vmatpush.bf16.msra.mxu1 %v1662_v45  ;;  %v531_v45 = vcvt.s32.f32 %v403_v37  ;;  %v532_v47 = vcvt.s32.f32 %v404_v39  ;;  %v648_v13 = vpack.c.bf16 %v540_v7, %v536_v6  ;;  %v420_v19 = vunpack.c.3.s8 %v352_v57  ;;  %v356_v37 = vld [vmem:[%s1936_s10 + $0x68] sm:$0xff]  ;;  %v358_v39 = vld [vmem:[%s1936_s10 + $0x78] sm:$0xff] }
  0x2b   : > { %1072 = vmatpush.bf16.msra.mxu2 %v1670_v50  ;;  %v530_v50 = vcvt.s32.f32 %v402_v42  ;;  %v417_v20 = vunpack.c.2.s8 %v353_v58  ;;  %v421_v21 = vunpack.c.3.s8 %v353_v58  ;;  %v418_v22 = vunpack.c.2.s8 %v354_v59 }
  0x2c   : > { %1161 = vmatpush.bf16.msra.mxu3 %v1678_v51  ;;  %895 = vmatmul.bf16.vlgmr.msra.gmra.mxu0 %v631_v52  ;;  %v534_v51 = vcvt.s32.f32 %v406_v43  ;;  %v643_v52 = vpack.c.bf16 %v531_v45, %v527_v44  ;;  %v422_v23 = vunpack.c.3.s8 %v354_v59  ;;  %v543_v24 = vcvt.s32.f32 %v415_v16  ;;  %v359_v16 = vld [vmem:[%s1936_s10 + $0x80] sm:$0xff] }
  0x2d   : > { %984 = vmatmul.bf16.vlgmr.msra.gmra.mxu1 %v632_v53  ;;  %v644_v53 = vpack.c.bf16 %v532_v47, %v528_v46  ;;  %v547_v25 = vcvt.s32.f32 %v419_v17  ;;  %v544_v26 = vcvt.s32.f32 %v416_v18  ;;  %v548_v27 = vcvt.s32.f32 %v420_v19  ;;  %v360_v17 = vld [vmem:[%s1936_s10 + $0x88] sm:$0xff]  ;;  %v361_v18 = vld [vmem:[%s1936_s10 + $0x90] sm:$0xff]  ;;  %v362_v19 = vld [vmem:[%s1936_s10 + $0x98] sm:$0xff] }
  0x2e   : > { %1073 = vmatmul.bf16.vlgmr.msra.gmra.mxu2 %v633_v54  ;;  %v645_v54 = vpack.c.bf16 %v533_v49, %v529_v48  ;;  %v545_v28 = vcvt.s32.f32 %v417_v20  ;;  %v549_v29 = vcvt.s32.f32 %v421_v21  ;;  %v546_v30 = vcvt.s32.f32 %v418_v22 }
  0x2f   : > { %1162 = vmatmul.bf16.vlgmr.msra.gmra.mxu3 %v634_v55  ;;  %v646_v55 = vpack.c.bf16 %v534_v51, %v530_v50  ;;  %v550_v31 = vcvt.s32.f32 %v422_v23  ;;  %v423_v40 = vunpack.c.0.s8 %v355_v36  ;;  %v427_v41 = vunpack.c.1.s8 %v355_v36 }
  0x30   : > { %v424_v42 = vunpack.c.0.s8 %v356_v37  ;;  %v428_v43 = vunpack.c.1.s8 %v356_v37  ;;  %v425_v44 = vunpack.c.0.s8 %v357_v38  ;;  %v429_v45 = vunpack.c.1.s8 %v357_v38 }
  0x31   : > { %v426_v46 = vunpack.c.0.s8 %v358_v39  ;;  %v430_v47 = vunpack.c.1.s8 %v358_v39  ;;  %v551_v48 = vcvt.s32.f32 %v423_v40  ;;  %v555_v49 = vcvt.s32.f32 %v427_v41 }
  0x32   : > { %v552_v50 = vcvt.s32.f32 %v424_v42  ;;  %v556_v51 = vcvt.s32.f32 %v428_v43  ;;  %v431_v60 = vunpack.c.2.s8 %v355_v36  ;;  %v435_v61 = vunpack.c.3.s8 %v355_v36 }
  0x33   : > { %v655_v56 = vpack.c.bf16 %v555_v49, %v551_v48  ;;  %v432_v62 = vunpack.c.2.s8 %v356_v37  ;;  %v436_v63 = vunpack.c.3.s8 %v356_v37  ;;  %v439_v20 = vunpack.c.0.s8 %v359_v16 }
  0x34   : > { %v656_v57 = vpack.c.bf16 %v556_v51, %v552_v50  ;;  %v559_v4 = vcvt.s32.f32 %v431_v60  ;;  %v563_v5 = vcvt.s32.f32 %v435_v61  ;;  %v443_v21 = vunpack.c.1.s8 %v359_v16 }
  0x35   : > { %v560_v6 = vcvt.s32.f32 %v432_v62  ;;  %v564_v7 = vcvt.s32.f32 %v436_v63  ;;  %v440_v22 = vunpack.c.0.s8 %v360_v17  ;;  %v444_v23 = vunpack.c.1.s8 %v360_v17 }
  0x36   : > { %v447_v42 = vunpack.c.2.s8 %v359_v16  ;;  %v449_v48 = vunpack.c.2.s8 %v361_v18 }
  0x3c   : > { %900 = vmatmul.bf16.gmra.mxu0 %v635_v8  ;;  %v537_v8 = vcvt.s32.f32 %v409_v0  ;;  %v433_v0 = vunpack.c.2.s8 %v357_v38 }
  0x3d   : > { %989 = vmatmul.bf16.gmra.mxu1 %v636_v9  ;;  %v541_v9 = vcvt.s32.f32 %v413_v1  ;;  %v437_v1 = vunpack.c.3.s8 %v357_v38 }
  0x3e   : > { %1078 = vmatmul.bf16.gmra.mxu2 %v637_v10  ;;  %v538_v10 = vcvt.s32.f32 %v410_v2  ;;  %v434_v2 = vunpack.c.2.s8 %v358_v39 }
  0x3f   : > { %1167 = vmatmul.bf16.gmra.mxu3 %v638_v11  ;;  %v542_v11 = vcvt.s32.f32 %v414_v3  ;;  %v649_v14 = vpack.c.bf16 %v541_v9, %v537_v8  ;;  %v438_v3 = vunpack.c.3.s8 %v358_v39  ;;  %v561_v8 = vcvt.s32.f32 %v433_v0 }
  0x40   : > { %v565_v9 = vcvt.s32.f32 %v437_v1 }
  0x41   : > { %v650_v15 = vpack.c.bf16 %v542_v11, %v538_v10  ;;  %v562_v10 = vcvt.s32.f32 %v434_v2  ;;  %v566_v11 = vcvt.s32.f32 %v438_v3 }
  0x4c   : > { %905 = vmatmul.bf16.gmra.mxu0 %v639_v32  ;;  %v651_v32 = vpack.c.bf16 %v547_v25, %v543_v24  ;;  %v441_v24 = vunpack.c.0.s8 %v361_v18  ;;  %v445_v25 = vunpack.c.1.s8 %v361_v18 }
  0x4d   : > { %994 = vmatmul.bf16.gmra.mxu1 %v640_v33  ;;  %v652_v33 = vpack.c.bf16 %v548_v27, %v544_v26  ;;  %v442_v26 = vunpack.c.0.s8 %v362_v19  ;;  %v446_v27 = vunpack.c.1.s8 %v362_v19 }
  0x4e   : > { %1083 = vmatmul.bf16.gmra.mxu2 %v641_v34  ;;  %v653_v34 = vpack.c.bf16 %v549_v29, %v545_v28  ;;  %v567_v28 = vcvt.s32.f32 %v439_v20  ;;  %v571_v29 = vcvt.s32.f32 %v443_v21 }
  0x4f   : > { %1172 = vmatmul.bf16.gmra.mxu3 %v642_v35  ;;  %v654_v35 = vpack.c.bf16 %v550_v31, %v546_v30  ;;  %v568_v30 = vcvt.s32.f32 %v440_v22  ;;  %v572_v31 = vcvt.s32.f32 %v444_v23 }
  0x50   : > { %v663_v36 = vpack.c.bf16 %v571_v29, %v567_v28 }
  0x51   : > { %v664_v37 = vpack.c.bf16 %v572_v31, %v568_v30 }
  0x5c   : > { %910 = vmatmul.bf16.gmra.mxu0 %v643_v52  ;;  %v553_v52 = vcvt.s32.f32 %v425_v44 }
  0x5d   : > { %999 = vmatmul.bf16.gmra.mxu1 %v644_v53  ;;  %v557_v53 = vcvt.s32.f32 %v429_v45  ;;  %v451_v45 = vunpack.c.3.s8 %v359_v16  ;;  %v2003_v16 = vld [vmem:[%s1936_s10 + $0xa8] sm:$0xff] }
  0x5e   : > { %1088 = vmatmul.bf16.gmra.mxu2 %v645_v54  ;;  %v554_v54 = vcvt.s32.f32 %v426_v46  ;;  %v448_v46 = vunpack.c.2.s8 %v360_v17 }
  0x5f   : > { %1177 = vmatmul.bf16.gmra.mxu3 %v646_v55  ;;  %v558_v55 = vcvt.s32.f32 %v430_v47  ;;  %v657_v58 = vpack.c.bf16 %v557_v53, %v553_v52  ;;  %v452_v47 = vunpack.c.3.s8 %v360_v17  ;;  %v453_v52 = vunpack.c.3.s8 %v361_v18  ;;  %v2006_v17 = vld [vmem:[%s1936_s10 + $0xb0] sm:$0xff]  ;;  %v2014_v18 = vld [vmem:[%s1936_s10 + $0xb8] sm:$0xff] }
  0x60   : > { %v450_v53 = vunpack.c.2.s8 %v362_v19  ;;  %v461_v30 = vunpack.c.1.s8 %v2006_v17  ;;  %v458_v31 = vunpack.c.0.s8 %v2014_v18 }
  0x61   : > { %v658_v59 = vpack.c.bf16 %v558_v55, %v554_v54  ;;  %v454_v54 = vunpack.c.3.s8 %v362_v19  ;;  %v575_v55 = vcvt.s32.f32 %v447_v42  ;;  %v581_v61 = vcvt.s32.f32 %v453_v52 }
  0x62   : > { %v578_v62 = vcvt.s32.f32 %v450_v53 }
  0x63   : > { %v582_v63 = vcvt.s32.f32 %v454_v54 }
  0x6c   : > { %915 = vmatmul.bf16.gmra.mxu0 %v647_v12  ;;  %v659_v12 = vpack.c.bf16 %v563_v5, %v559_v4 }
  0x6d   : > { %1004 = vmatmul.bf16.gmra.mxu1 %v648_v13  ;;  %v660_v13 = vpack.c.bf16 %v564_v7, %v560_v6 }
  0x6e   : > { %1093 = vmatmul.bf16.gmra.mxu2 %v649_v14  ;;  %v661_v14 = vpack.c.bf16 %v565_v9, %v561_v8 }
  0x6f   : > { %1182 = vmatmul.bf16.gmra.mxu3 %v650_v15  ;;  %v662_v15 = vpack.c.bf16 %v566_v11, %v562_v10  ;;  %v670_v10 = vpack.c.bf16 %v582_v63, %v578_v62  ;;  %v1995_v11 = vstv %s1342_s13  ;;  %v468_v62 = vunpack.c.3.s8 %v2003_v16 }
  0x70   : > { %v465_v63 = vunpack.c.2.s8 %v2006_v17 }
  0x7c   : > { %920 = vmatmul.bf16.gmra.mxu0 %v651_v32  ;;  %v569_v32 = vcvt.s32.f32 %v441_v24  ;;  %v456_v24 = vunpack.c.0.s8 %v2003_v16 }
  0x7d   : > { %1009 = vmatmul.bf16.gmra.mxu1 %v652_v33  ;;  %v573_v33 = vcvt.s32.f32 %v445_v25  ;;  %v460_v25 = vunpack.c.1.s8 %v2003_v16 }
  0x7e   : > { %1098 = vmatmul.bf16.gmra.mxu2 %v653_v34  ;;  %v570_v34 = vcvt.s32.f32 %v442_v26  ;;  %v457_v26 = vunpack.c.0.s8 %v2006_v17 }
  0x7f   : > { %1187 = vmatmul.bf16.gmra.mxu3 %v654_v35  ;;  %v574_v35 = vcvt.s32.f32 %v446_v27  ;;  %v665_v40 = vpack.c.bf16 %v573_v33, %v569_v32  ;;  %v462_v32 = vunpack.c.1.s8 %v2014_v18 }
  0x81   : > { %v666_v41 = vpack.c.bf16 %v574_v35, %v570_v34  ;;  %v584_v35 = vcvt.s32.f32 %v456_v24 }
  0x8c   : > { %925 = vmatmul.bf16.gmra.mxu0 %v655_v56  ;;  %v579_v56 = vcvt.s32.f32 %v451_v45 }
  0x8d   : > { %1014 = vmatmul.bf16.gmra.mxu1 %v656_v57  ;;  %v576_v57 = vcvt.s32.f32 %v448_v46 }
  0x8e   : > { %1103 = vmatmul.bf16.gmra.mxu2 %v657_v58  ;;  %v580_v58 = vcvt.s32.f32 %v452_v47  ;;  %v667_v3 = vpack.c.bf16 %v579_v56, %v575_v55 }
  0x8f   : > { %1192 = vmatmul.bf16.gmra.mxu3 %v658_v59  ;;  %v577_v59 = vcvt.s32.f32 %v449_v48 }
  0x90   : > { %v668_v4 = vpack.c.bf16 %v580_v58, %v576_v57 }
  0x91   : > { %v669_v9 = vpack.c.bf16 %v581_v61, %v577_v59  ;;  %v464_v61 = vunpack.c.2.s8 %v2003_v16 }
  0x9c   : > { %930 = vmatmul.bf16.gmra.mxu0 %v659_v12 }
  0x9d   : > { %1019 = vmatmul.bf16.gmra.mxu1 %v660_v13  ;;  %v1998_v13 = vld [vmem:[%s1936_s10 + $0xa0] sm:$0xff] }
  0x9e   : > { %1108 = vmatmul.bf16.gmra.mxu2 %v661_v14  ;;  %v455_v20 = vunpack.c.0.s8 %v1998_v13  ;;  %v459_v23 = vunpack.c.1.s8 %v1998_v13  ;;  %v463_v57 = vunpack.c.2.s8 %v1998_v13 }
  0x9f   : > { %1197 = vmatmul.bf16.gmra.mxu3 %v662_v15 }
  0xa0   : > { %v583_v33 = vcvt.s32.f32 %v455_v20  ;;  %v587_v34 = vcvt.s32.f32 %v459_v23 }
  0xa2   : > { %v671_v45 = vpack.c.bf16 %v587_v34, %v583_v33  ;;  %v2048_v33 = vld [vmem:[%s1936_s10 + $0xd8] sm:$0xff] }
  0xa9   : > { %v896_v38 = vpop.f32.mrf.mxu0 }
  0xaa   : > { %v985_v39 = vpop.f32.mrf.mxu1 }
  0xab   : > { %v986_v49 = vadd.f32 %v985_v39, %v896_v38  ;;  %v589_v39 = vcvt.s32.f32 %v461_v30 }
  0xac   : > { %935 = vmatmul.bf16.gmra.mxu0 %v663_v36  ;;  %v588_v36 = vcvt.s32.f32 %v460_v25 }
  0xad   : > { %1024 = vmatmul.bf16.gmra.mxu1 %v664_v37  ;;  %v585_v37 = vcvt.s32.f32 %v457_v26 }
  0xae   : > { %1113 = vmatmul.bf16.gmra.mxu2 %v665_v40  ;;  %v586_v40 = vcvt.s32.f32 %v458_v31  ;;  %v672_v46 = vpack.c.bf16 %v588_v36, %v584_v35  ;;  %v2042_v31 = vld [vmem:[%s1936_s10 + $0xc8] sm:$0xff] }
  0xaf   : > { %1202 = vmatmul.bf16.gmra.mxu3 %v666_v41  ;;  %v590_v41 = vcvt.s32.f32 %v462_v32  ;;  %v2045_v32 = vld [vmem:[%s1936_s10 + $0xd0] sm:$0xff] }
  0xb1   : > { %v1074_v43 = vpop.f32.mrf.mxu2  ;;  %v898_v50 = vpop.f32.mrf.mxu0  ;;  %v674_v52 = vpack.c.bf16 %v590_v41, %v586_v40  ;;  %v476_v40 = vunpack.c.1.s8 %v2042_v31  ;;  %v473_v41 = vunpack.c.0.s8 %v2045_v32 }
  0xb2   : > { %v1163_v44 = vpop.f32.mrf.mxu3  ;;  %v987_v51 = vpop.f32.mrf.mxu1  ;;  %v1075_v60 = vadd.f32 %v1074_v43, %v986_v49 }
  0xb3   : > { %v988_v0 = vadd.f32 %v987_v51, %v898_v50  ;;  %v673_v51 = vpack.c.bf16 %v589_v39, %v585_v37  ;;  %v472_v39 = vunpack.c.0.s8 %v2042_v31 }
  0xb4   : > { %v1164_v5 = vadd.f32 %v1163_v44, %v1075_v60  ;;  %v467_v60 = vunpack.c.3.s8 %v1998_v13 }
  0xb6   : > { %v1344_v14 = vmul.f32 %v1995_v11, %v1164_v5  ;;  %v470_v5 = vunpack.c.3.s8 %v2014_v18 }
  0xb9   : > { %v1076_v1 = vpop.f32.mrf.mxu2  ;;  %v901_v7 = vpop.f32.mrf.mxu0 }
  0xba   : > { %v1165_v2 = vpop.f32.mrf.mxu3  ;;  %v1077_v6 = vadd.f32 %v1076_v1, %v988_v0  ;;  %v990_v8 = vpop.f32.mrf.mxu1 }
  0xbb   : > { %v991_v27 = vadd.f32 %v990_v8, %v901_v7  ;;  %v595_v7 = vcvt.s32.f32 %v467_v60  ;;  %v592_v8 = vcvt.s32.f32 %v464_v61 }
  0xbc   : > { %v1166_v12 = vadd.f32 %v1165_v2, %v1077_v6  ;;  %940 = vmatmul.bf16.gmra.mxu0 %v667_v3  ;;  %v469_v3 = vunpack.c.3.s8 %v2006_v17  ;;  %v591_v6 = vcvt.s32.f32 %v463_v57 }
  0xbd   : > { %1029 = vmatmul.bf16.gmra.mxu1 %v668_v4  ;;  %v466_v4 = vunpack.c.2.s8 %v2014_v18 }
  0xbe   : > { %v1345_v15 = vmul.f32 %v1995_v11, %v1166_v12  ;;  %1118 = vmatmul.bf16.gmra.mxu2 %v669_v9  ;;  %v596_v9 = vcvt.s32.f32 %v468_v62  ;;  %v597_v13 = vcvt.s32.f32 %v469_v3 }
  0xbf   : > { %1207 = vmatmul.bf16.gmra.mxu3 %v670_v10  ;;  %v593_v10 = vcvt.s32.f32 %v465_v63 }
  0xc0   : > { %v1689_v19 = vpack.c.bf16 %v1345_v15, %v1344_v14  ;;  %v594_v14 = vcvt.s32.f32 %v466_v4  ;;  %v598_v15 = vcvt.s32.f32 %v470_v5  ;;  %v676_v17 = vpack.c.bf16 %v596_v9, %v592_v8 }
  0xc1   : > { %v1079_v21 = vpop.f32.mrf.mxu2  ;;  %v903_v28 = vpop.f32.mrf.mxu0  ;;  %v677_v25 = vpack.c.bf16 %v597_v13, %v593_v10  ;;  %v480_v13 = vunpack.c.2.s8 %v2042_v31 }
  0xc2   : > { %v1168_v22 = vpop.f32.mrf.mxu3  ;;  %1690 = vst [vmem:[%s2011_s19] sm:$0xff] %v1689_v19   ;;  %v992_v29 = vpop.f32.mrf.mxu1  ;;  %v1080_v38 = vadd.f32 %v1079_v21, %v991_v27  ;;  %v675_v21 = vpack.c.bf16 %v595_v7, %v591_v6  ;;  %v678_v26 = vpack.c.bf16 %v598_v15, %v594_v14  ;;  %v484_v14 = vunpack.c.3.s8 %v2042_v31 }
  0xc3   : > { %v993_v42 = vadd.f32 %v992_v29, %v903_v28  ;;  %v2037_v28 = vld [vmem:[%s1936_s10 + $0xc0] sm:$0xff]  ;;  %v481_v15 = vunpack.c.2.s8 %v2045_v32 }
  0xc4   : > { %v1169_v47 = vadd.f32 %v1168_v22, %v1080_v38  ;;  %v471_v35 = vunpack.c.0.s8 %v2037_v28  ;;  %v475_v38 = vunpack.c.1.s8 %v2037_v28  ;;  %v479_v8 = vunpack.c.2.s8 %v2037_v28 }
  0xc6   : > { %v1346_v54 = vmul.f32 %v1995_v11, %v1169_v47  ;;  %v478_v47 = vunpack.c.1.s8 %v2048_v33 }
  0xc9   : > { %v1081_v43 = vpop.f32.mrf.mxu2  ;;  %v906_v49 = vpop.f32.mrf.mxu0 }
  0xca   : > { %v1170_v44 = vpop.f32.mrf.mxu3  ;;  %v1082_v48 = vadd.f32 %v1081_v43, %v993_v42  ;;  %v995_v50 = vpop.f32.mrf.mxu1 }
  0xcb   : > { %v996_v0 = vadd.f32 %v995_v50, %v906_v49  ;;  %v603_v49 = vcvt.s32.f32 %v475_v38  ;;  %v600_v50 = vcvt.s32.f32 %v472_v39 }
  0xcc   : > { %v1171_v53 = vadd.f32 %v1170_v44, %v1082_v48  ;;  %945 = vmatmul.bf16.gmra.mxu0 %v671_v45  ;;  %v477_v45 = vunpack.c.1.s8 %v2045_v32  ;;  %v599_v48 = vcvt.s32.f32 %v471_v35 }
  0xcd   : > { %1034 = vmatmul.bf16.gmra.mxu1 %v672_v46  ;;  %v474_v46 = vunpack.c.0.s8 %v2048_v33 }
  0xce   : > { %v1347_v55 = vmul.f32 %v1995_v11, %v1171_v53  ;;  %1123 = vmatmul.bf16.gmra.mxu2 %v673_v51  ;;  %v604_v51 = vcvt.s32.f32 %v476_v40  ;;  %v679_v60 = vpack.c.bf16 %v603_v49, %v599_v48  ;;  %v2082_v48 = vld [vmem:[%s1936_s10 + $0xf8] sm:$0xff] }
  0xcf   : > { %1212 = vmatmul.bf16.gmra.mxu3 %v674_v52  ;;  %v601_v52 = vcvt.s32.f32 %v473_v41 }
  0xd0   : > { %v1694_v56 = vpack.c.bf16 %v1347_v55, %v1346_v54  ;;  %v605_v54 = vcvt.s32.f32 %v477_v45  ;;  %v602_v55 = vcvt.s32.f32 %v474_v46  ;;  %v680_v61 = vpack.c.bf16 %v604_v51, %v600_v50  ;;  %v2076_v46 = vld [vmem:[%s1936_s10 + $0xe8] sm:$0xff] }
  0xd1   : > { %v1084_v58 = vpop.f32.mrf.mxu2  ;;  %v908_v1 = vpop.f32.mrf.mxu0 }
  0xd2   : > { %v1173_v59 = vpop.f32.mrf.mxu3  ;;  %1766 = vst [vmem:[%s2011_s19 + $0x8] sm:$0xff] %v1694_v56   ;;  %v997_v2 = vpop.f32.mrf.mxu1  ;;  %v1085_v12 = vadd.f32 %v1084_v58, %v996_v0  ;;  %v606_v56 = vcvt.s32.f32 %v478_v47  ;;  %v2079_v47 = vld [vmem:[%s1936_s10 + $0xf0] sm:$0xff] }
  0xd3   : > { %v998_v16 = vadd.f32 %v997_v2, %v908_v1  ;;  %v681_v2 = vpack.c.bf16 %v605_v54, %v601_v52  ;;  %v488_v54 = vunpack.c.0.s8 %v2076_v46 }
  0xd4   : > { %v1174_v22 = vadd.f32 %v1173_v59, %v1085_v12  ;;  %v682_v3 = vpack.c.bf16 %v606_v56, %v602_v55  ;;  %v483_v12 = vunpack.c.3.s8 %v2037_v28  ;;  %v492_v55 = vunpack.c.1.s8 %v2076_v46 }
  0xd5   : > { %v489_v56 = vunpack.c.0.s8 %v2079_v47 }
  0xd6   : > { %v1348_v29 = vmul.f32 %v1995_v11, %v1174_v22  ;;  %v486_v22 = vunpack.c.3.s8 %v2048_v33 }
  0xd9   : > { %v1086_v19 = vpop.f32.mrf.mxu2  ;;  %v911_v23 = vpop.f32.mrf.mxu0 }
  0xda   : > { %v1175_v20 = vpop.f32.mrf.mxu3  ;;  %v1087_v18 = vadd.f32 %v1086_v19, %v998_v16  ;;  %v1000_v24 = vpop.f32.mrf.mxu1 }
  0xdb   : > { %v1001_v42 = vadd.f32 %v1000_v24, %v911_v23  ;;  %v611_v23 = vcvt.s32.f32 %v483_v12  ;;  %v608_v24 = vcvt.s32.f32 %v480_v13 }
  0xdc   : > { %v1176_v27 = vadd.f32 %v1175_v20, %v1087_v18  ;;  %950 = vmatmul.bf16.gmra.mxu0 %v675_v21  ;;  %v485_v21 = vunpack.c.3.s8 %v2045_v32  ;;  %v607_v18 = vcvt.s32.f32 %v479_v8 }
  0xdd   : > { %1039 = vmatmul.bf16.gmra.mxu1 %v676_v17  ;;  %v482_v17 = vunpack.c.2.s8 %v2048_v33 }
  0xde   : > { %v1349_v30 = vmul.f32 %v1995_v11, %v1176_v27  ;;  %1128 = vmatmul.bf16.gmra.mxu2 %v677_v25  ;;  %v612_v25 = vcvt.s32.f32 %v484_v14  ;;  %v613_v28 = vcvt.s32.f32 %v485_v21 }
  0xdf   : > { %1217 = vmatmul.bf16.gmra.mxu3 %v678_v26  ;;  %v609_v26 = vcvt.s32.f32 %v481_v15 }
  0xe0   : > { %v1699_v34 = vpack.c.bf16 %v1349_v30, %v1348_v29  ;;  %v610_v29 = vcvt.s32.f32 %v482_v17  ;;  %v614_v30 = vcvt.s32.f32 %v486_v22  ;;  %v684_v32 = vpack.c.bf16 %v612_v25, %v608_v24 }
  0xe1   : > { %v1089_v36 = vpop.f32.mrf.mxu2  ;;  %v913_v43 = vpop.f32.mrf.mxu0  ;;  %v685_v40 = vpack.c.bf16 %v613_v28, %v609_v26  ;;  %v496_v28 = vunpack.c.2.s8 %v2076_v46 }
  0xe2   : > { %v1178_v37 = vpop.f32.mrf.mxu3  ;;  %1767 = vst [vmem:[%s2011_s19 + $0x10] sm:$0xff] %v1699_v34   ;;  %v1002_v44 = vpop.f32.mrf.mxu1  ;;  %v1090_v53 = vadd.f32 %v1089_v36, %v1001_v42  ;;  %v683_v36 = vpack.c.bf16 %v611_v23, %v607_v18  ;;  %v686_v41 = vpack.c.bf16 %v614_v30, %v610_v29  ;;  %v500_v29 = vunpack.c.3.s8 %v2076_v46 }
  0xe3   : > { %v1003_v57 = vadd.f32 %v1002_v44, %v913_v43  ;;  %v2071_v43 = vld [vmem:[%s1936_s10 + $0xe0] sm:$0xff]  ;;  %v497_v30 = vunpack.c.2.s8 %v2079_v47 }
  0xe4   : > { %v1179_v62 = vadd.f32 %v1178_v37, %v1090_v53  ;;  %v487_v50 = vunpack.c.0.s8 %v2071_v43  ;;  %v491_v53 = vunpack.c.1.s8 %v2071_v43  ;;  %v495_v24 = vunpack.c.2.s8 %v2071_v43 }
  0xe6   : > { %v1350_v5 = vmul.f32 %v1995_v11, %v1179_v62  ;;  %v494_v62 = vunpack.c.1.s8 %v2082_v48 }
  0xe9   : > { %v1091_v58 = vpop.f32.mrf.mxu2  ;;  %v916_v0 = vpop.f32.mrf.mxu0 }
  0xea   : > { %v1180_v59 = vpop.f32.mrf.mxu3  ;;  %v1092_v63 = vadd.f32 %v1091_v58, %v1003_v57  ;;  %v1005_v1 = vpop.f32.mrf.mxu1 }
  0xeb   : > { %v1006_v16 = vadd.f32 %v1005_v1, %v916_v0  ;;  %v619_v0 = vcvt.s32.f32 %v491_v53  ;;  %v616_v1 = vcvt.s32.f32 %v488_v54 }
  0xec   : > { %v1181_v4 = vadd.f32 %v1180_v59, %v1092_v63  ;;  %955 = vmatmul.bf16.gmra.mxu0 %v679_v60  ;;  %v493_v60 = vunpack.c.1.s8 %v2079_v47  ;;  %v615_v63 = vcvt.s32.f32 %v487_v50 }
  0xed   : > { %1044 = vmatmul.bf16.gmra.mxu1 %v680_v61  ;;  %v490_v61 = vunpack.c.0.s8 %v2082_v48 }
  0xee   : > { %v1351_v6 = vmul.f32 %v1995_v11, %v1181_v4  ;;  %1133 = vmatmul.bf16.gmra.mxu2 %v681_v2  ;;  %v620_v2 = vcvt.s32.f32 %v492_v55  ;;  %v687_v12 = vpack.c.bf16 %v619_v0, %v615_v63 }
  0xef   : > { %1222 = vmatmul.bf16.gmra.mxu3 %v682_v3  ;;  %v617_v3 = vcvt.s32.f32 %v489_v56 }
  0xf0   : > { %v1704_v7 = vpack.c.bf16 %v1351_v6, %v1350_v5  ;;  %v621_v5 = vcvt.s32.f32 %v493_v60  ;;  %v618_v6 = vcvt.s32.f32 %v490_v61  ;;  %v688_v13 = vpack.c.bf16 %v620_v2, %v616_v1 }
  0xf1   : > { %v1094_v9 = vpop.f32.mrf.mxu2  ;;  %v918_v19 = vpop.f32.mrf.mxu0 }
  0xf2   : > { %v1183_v10 = vpop.f32.mrf.mxu3  ;;  %1768 = vst [vmem:[%s2011_s19 + $0x18] sm:$0xff] %v1704_v7   ;;  %v1007_v20 = vpop.f32.mrf.mxu1  ;;  %v1095_v27 = vadd.f32 %v1094_v9, %v1006_v16  ;;  %v622_v7 = vcvt.s32.f32 %v494_v62 }
  0xf3   : > { %v1008_v31 = vadd.f32 %v1007_v20, %v918_v19  ;;  %v689_v20 = vpack.c.bf16 %v621_v5, %v617_v3 }
  0xf4   : > { %v1184_v37 = vadd.f32 %v1183_v10, %v1095_v27  ;;  %v690_v21 = vpack.c.bf16 %v622_v7, %v618_v6  ;;  %v499_v27 = vunpack.c.3.s8 %v2071_v43 }
  0xf6   : > { %v1352_v44 = vmul.f32 %v1995_v11, %v1184_v37  ;;  %v502_v37 = vunpack.c.3.s8 %v2082_v48 }
  0xf9   : > { %v1096_v34 = vpop.f32.mrf.mxu2  ;;  %v921_v38 = vpop.f32.mrf.mxu0 }
  0xfa   : > { %v1185_v35 = vpop.f32.mrf.mxu3  ;;  %v1097_v33 = vadd.f32 %v1096_v34, %v1008_v31  ;;  %v1010_v39 = vpop.f32.mrf.mxu1 }
  0xfb   : > { %v1011_v57 = vadd.f32 %v1010_v39, %v921_v38  ;;  %v627_v38 = vcvt.s32.f32 %v499_v27  ;;  %v624_v39 = vcvt.s32.f32 %v496_v28 }
  0xfc   : > { %v1186_v42 = vadd.f32 %v1185_v35, %v1097_v33  ;;  %960 = vmatmul.bf16.gmra.mxu0 %v683_v36  ;;  %v501_v36 = vunpack.c.3.s8 %v2079_v47  ;;  %v623_v33 = vcvt.s32.f32 %v495_v24 }
  0xfd   : > { %1049 = vmatmul.bf16.gmra.mxu1 %v684_v32  ;;  %v498_v32 = vunpack.c.2.s8 %v2082_v48 }
  0xfe   : > { %v1353_v45 = vmul.f32 %v1995_v11, %v1186_v42  ;;  %1138 = vmatmul.bf16.gmra.mxu2 %v685_v40  ;;  %v628_v40 = vcvt.s32.f32 %v500_v29  ;;  %v629_v43 = vcvt.s32.f32 %v501_v36 }
  0xff   : > { %1227 = vmatmul.bf16.gmra.mxu3 %v686_v41  ;;  %v625_v41 = vcvt.s32.f32 %v497_v30 }
 0x100   : > { %v1709_v49 = vpack.c.bf16 %v1353_v45, %v1352_v44  ;;  %v626_v44 = vcvt.s32.f32 %v498_v32  ;;  %v630_v45 = vcvt.s32.f32 %v502_v37 }
 0x101   : > { %v1099_v51 = vpop.f32.mrf.mxu2  ;;  %v923_v58 = vpop.f32.mrf.mxu0  ;;  %v693_v48 = vpack.c.bf16 %v629_v43, %v625_v41 }
 0x102   : > { %v1188_v52 = vpop.f32.mrf.mxu3  ;;  %1769 = vst [vmem:[%s2011_s19 + $0x20] sm:$0xff] %v1709_v49   ;;  %v1012_v59 = vpop.f32.mrf.mxu1  ;;  %v1100_v4 = vadd.f32 %v1099_v51, %v1011_v57  ;;  %v691_v51 = vpack.c.bf16 %v627_v38, %v623_v33  ;;  %v694_v56 = vpack.c.bf16 %v630_v45, %v626_v44 }
 0x103   : > { %v1013_v8 = vadd.f32 %v1012_v59, %v923_v58 }
 0x104   : > { %v1189_v14 = vadd.f32 %v1188_v52, %v1100_v4  ;;  %v692_v52 = vpack.c.bf16 %v628_v40, %v624_v39 }
 0x106   : > { %v1354_v22 = vmul.f32 %v1995_v11, %v1189_v14 }
 0x109   : > { %v1101_v9 = vpop.f32.mrf.mxu2  ;;  %v926_v16 = vpop.f32.mrf.mxu0 }
 0x10a   : > { %v1190_v10 = vpop.f32.mrf.mxu3  ;;  %v1102_v15 = vadd.f32 %v1101_v9, %v1013_v8  ;;  %v1015_v19 = vpop.f32.mrf.mxu1 }
 0x10b   : > { %v1016_v31 = vadd.f32 %v1015_v19, %v926_v16 }
 0x10c   : > { %v1191_v17 = vadd.f32 %v1190_v10, %v1102_v15  ;;  %965 = vmatmul.bf16.gmra.mxu0 %v687_v12 }
 0x10d   : > { %1054 = vmatmul.bf16.gmra.mxu1 %v688_v13 }
 0x10e   : > { %v1355_v18 = vmul.f32 %v1995_v11, %v1191_v17  ;;  %1143 = vmatmul.bf16.gmra.mxu2 %v689_v20 }
 0x10f   : > { %1232 = vmatmul.bf16.gmra.mxu3 %v690_v21 }
 0x110   : > { %v1714_v23 = vpack.c.bf16 %v1355_v18, %v1354_v22 }
 0x111   : > { %v1104_v25 = vpop.f32.mrf.mxu2  ;;  %v928_v34 = vpop.f32.mrf.mxu0 }
 0x112   : > { %v1193_v26 = vpop.f32.mrf.mxu3  ;;  %1770 = vst [vmem:[%s2011_s19 + $0x28] sm:$0xff] %v1714_v23   ;;  %v1017_v35 = vpop.f32.mrf.mxu1  ;;  %v1105_v42 = vadd.f32 %v1104_v25, %v1016_v31 }
 0x113   : > { %v1018_v46 = vadd.f32 %v1017_v35, %v928_v34 }
 0x114   : > { %v1194_v53 = vadd.f32 %v1193_v26, %v1105_v42 }
 0x116   : > { %v1356_v58 = vmul.f32 %v1995_v11, %v1194_v53 }
 0x119   : > { %v1106_v49 = vpop.f32.mrf.mxu2  ;;  %v931_v54 = vpop.f32.mrf.mxu0 }
 0x11a   : > { %v1195_v50 = vpop.f32.mrf.mxu3  ;;  %v1107_v47 = vadd.f32 %v1106_v49, %v1018_v46  ;;  %v1020_v55 = vpop.f32.mrf.mxu1 }
 0x11b   : > { %v1021_v63 = vadd.f32 %v1020_v55, %v931_v54 }
 0x11c   : > { %v1196_v57 = vadd.f32 %v1195_v50, %v1107_v47  ;;  %970 = vmatmul.bf16.gmra.mxu0 %v691_v51 }
 0x11d   : > { %1059 = vmatmul.bf16.gmra.mxu1 %v692_v52 }
 0x11e   : > { %v1357_v59 = vmul.f32 %v1995_v11, %v1196_v57  ;;  %1148 = vmatmul.bf16.gmra.mxu2 %v693_v48 }
 0x11f   : > { %1237 = vmatmul.bf16.gmra.mxu3 %v694_v56 }
 0x120   : > { %v1719_v60 = vpack.c.bf16 %v1357_v59, %v1356_v58 }
 0x121   : > { %v1109_v61 = vpop.f32.mrf.mxu2  ;;  %v933_v0 = vpop.f32.mrf.mxu0 }
 0x122   : > { %v1198_v62 = vpop.f32.mrf.mxu3  ;;  %1771 = vst [vmem:[%s2011_s19 + $0x30] sm:$0xff] %v1719_v60   ;;  %v1022_v1 = vpop.f32.mrf.mxu1  ;;  %v1110_v2 = vadd.f32 %v1109_v61, %v1021_v63 }
 0x123   : > { %v1023_v3 = vadd.f32 %v1022_v1, %v933_v0 }
 0x124   : > { %v1199_v6 = vadd.f32 %v1198_v62, %v1110_v2 }
 0x126   : > { %v1358_v12 = vmul.f32 %v1995_v11, %v1199_v6 }
 0x129   : > { %v1111_v4 = vpop.f32.mrf.mxu2  ;;  %v936_v8 = vpop.f32.mrf.mxu0 }
 0x12a   : > { %v1200_v5 = vpop.f32.mrf.mxu3  ;;  %v1112_v7 = vadd.f32 %v1111_v4, %v1023_v3  ;;  %v1025_v9 = vpop.f32.mrf.mxu1 }
 0x12b   : > { %v1026_v19 = vadd.f32 %v1025_v9, %v936_v8 }
 0x12c   : > { %v1201_v10 = vadd.f32 %v1200_v5, %v1112_v7 }
 0x12e   : > { %v1359_v13 = vmul.f32 %v1995_v11, %v1201_v10 }
 0x130   : > { %v1724_v14 = vpack.c.bf16 %v1359_v13, %v1358_v12 }
 0x131   : > { %v1114_v15 = vpop.f32.mrf.mxu2  ;;  %v938_v20 = vpop.f32.mrf.mxu0 }
 0x132   : > { %v1203_v16 = vpop.f32.mrf.mxu3  ;;  %1772 = vst [vmem:[%s2011_s19 + $0x38] sm:$0xff] %v1724_v14   ;;  %v1027_v21 = vpop.f32.mrf.mxu1  ;;  %v1115_v17 = vadd.f32 %v1114_v15, %v1026_v19 }
 0x133   : > { %v1028_v22 = vadd.f32 %v1027_v21, %v938_v20 }
 0x134   : > { %v1204_v24 = vadd.f32 %v1203_v16, %v1115_v17 }
 0x136   : > { %v1360_v29 = vmul.f32 %v1995_v11, %v1204_v24 }
 0x139   : > { %v1116_v18 = vpop.f32.mrf.mxu2  ;;  %v941_v26 = vpop.f32.mrf.mxu0 }
 0x13a   : > { %v1205_v23 = vpop.f32.mrf.mxu3  ;;  %v1117_v25 = vadd.f32 %v1116_v18, %v1028_v22  ;;  %v1030_v27 = vpop.f32.mrf.mxu1 }
 0x13b   : > { %v1031_v36 = vadd.f32 %v1030_v27, %v941_v26 }
 0x13c   : > { %v1206_v28 = vadd.f32 %v1205_v23, %v1117_v25 }
 0x13e   : > { %v1361_v30 = vmul.f32 %v1995_v11, %v1206_v28 }
 0x140   : > { %v1729_v31 = vpack.c.bf16 %v1361_v30, %v1360_v29 }
 0x141   : > { %v1119_v34 = vpop.f32.mrf.mxu2  ;;  %v943_v32 = vpop.f32.mrf.mxu0 }
 0x142   : > { %v1208_v35 = vpop.f32.mrf.mxu3  ;;  %1773 = vst [vmem:[%s2011_s19 + $0x40] sm:$0xff] %v1729_v31   ;;  %v1032_v37 = vpop.f32.mrf.mxu1  ;;  %v1120_v33 = vadd.f32 %v1119_v34, %v1031_v36 }
 0x143   : > { %v1033_v38 = vadd.f32 %v1032_v37, %v943_v32 }
 0x144   : > { %v1209_v41 = vadd.f32 %v1208_v35, %v1120_v33 }
 0x146   : > { %v1362_v46 = vmul.f32 %v1995_v11, %v1209_v41 }
 0x149   : > { %v1121_v39 = vpop.f32.mrf.mxu2  ;;  %v946_v43 = vpop.f32.mrf.mxu0 }
 0x14a   : > { %v1210_v40 = vpop.f32.mrf.mxu3  ;;  %v1122_v42 = vadd.f32 %v1121_v39, %v1033_v38  ;;  %v1035_v44 = vpop.f32.mrf.mxu1 }
 0x14b   : > { %v1036_v53 = vadd.f32 %v1035_v44, %v946_v43 }
 0x14c   : > { %v1211_v45 = vadd.f32 %v1210_v40, %v1122_v42 }
 0x14e   : > { %v1363_v49 = vmul.f32 %v1995_v11, %v1211_v45 }
 0x150   : > { %v1734_v50 = vpack.c.bf16 %v1363_v49, %v1362_v46 }
 0x151   : > { %v1124_v51 = vpop.f32.mrf.mxu2  ;;  %v948_v47 = vpop.f32.mrf.mxu0 }
 0x152   : > { %v1213_v52 = vpop.f32.mrf.mxu3  ;;  %1774 = vst [vmem:[%s2011_s19 + $0x48] sm:$0xff] %v1734_v50   ;;  %v1037_v54 = vpop.f32.mrf.mxu1  ;;  %v1125_v55 = vadd.f32 %v1124_v51, %v1036_v53 }
 0x153   : > { %v1038_v48 = vadd.f32 %v1037_v54, %v948_v47 }
 0x154   : > { %v1214_v58 = vadd.f32 %v1213_v52, %v1125_v55 }
 0x156   : > { %v1364_v63 = vmul.f32 %v1995_v11, %v1214_v58 }
 0x159   : > { %v1126_v56 = vpop.f32.mrf.mxu2  ;;  %v951_v60 = vpop.f32.mrf.mxu0 }
 0x15a   : > { %v1215_v57 = vpop.f32.mrf.mxu3  ;;  %v1127_v59 = vadd.f32 %v1126_v56, %v1038_v48  ;;  %v1040_v61 = vpop.f32.mrf.mxu1 }
 0x15b   : > { %v1041_v4 = vadd.f32 %v1040_v61, %v951_v60 }
 0x15c   : > { %v1216_v62 = vadd.f32 %v1215_v57, %v1127_v59 }
 0x15e   : > { %v1365_v0 = vmul.f32 %v1995_v11, %v1216_v62 }
 0x160   : > { %v1739_v1 = vpack.c.bf16 %v1365_v0, %v1364_v63 }
 0x161   : > { %v1129_v2 = vpop.f32.mrf.mxu2  ;;  %v953_v5 = vpop.f32.mrf.mxu0 }
 0x162   : > { %v1218_v3 = vpop.f32.mrf.mxu3  ;;  %1775 = vst [vmem:[%s2011_s19 + $0x50] sm:$0xff] %v1739_v1   ;;  %v1042_v6 = vpop.f32.mrf.mxu1  ;;  %v1130_v7 = vadd.f32 %v1129_v2, %v1041_v4 }
 0x163   : > { %v1043_v8 = vadd.f32 %v1042_v6, %v953_v5 }
 0x164   : > { %v1219_v12 = vadd.f32 %v1218_v3, %v1130_v7 }
 0x166   : > { %v1366_v19 = vmul.f32 %v1995_v11, %v1219_v12 }
 0x169   : > { %v1131_v9 = vpop.f32.mrf.mxu2  ;;  %v956_v14 = vpop.f32.mrf.mxu0 }
 0x16a   : > { %v1220_v10 = vpop.f32.mrf.mxu3  ;;  %v1132_v13 = vadd.f32 %v1131_v9, %v1043_v8  ;;  %v1045_v15 = vpop.f32.mrf.mxu1 }
 0x16b   : > { %v1046_v18 = vadd.f32 %v1045_v15, %v956_v14 }
 0x16c   : > { %v1221_v16 = vadd.f32 %v1220_v10, %v1132_v13 }
 0x16e   : > { %v1367_v20 = vmul.f32 %v1995_v11, %v1221_v16 }
 0x170   : > { %v1744_v21 = vpack.c.bf16 %v1367_v20, %v1366_v19 }
 0x171   : > { %v1134_v17 = vpop.f32.mrf.mxu2  ;;  %v958_v23 = vpop.f32.mrf.mxu0 }
 0x172   : > { %v1223_v22 = vpop.f32.mrf.mxu3  ;;  %1776 = vst [vmem:[%s2011_s19 + $0x58] sm:$0xff] %v1744_v21   ;;  %v1047_v24 = vpop.f32.mrf.mxu1  ;;  %v1135_v25 = vadd.f32 %v1134_v17, %v1046_v18 }
 0x173   : > { %v1048_v26 = vadd.f32 %v1047_v24, %v958_v23 }
 0x174   : > { %v1224_v29 = vadd.f32 %v1223_v22, %v1135_v25 }
 0x176   : > { %v1368_v36 = vmul.f32 %v1995_v11, %v1224_v29 }
 0x179   : > { %v1136_v27 = vpop.f32.mrf.mxu2  ;;  %v961_v31 = vpop.f32.mrf.mxu0 }
 0x17a   : > { %v1225_v28 = vpop.f32.mrf.mxu3  ;;  %v1137_v30 = vadd.f32 %v1136_v27, %v1048_v26  ;;  %v1050_v34 = vpop.f32.mrf.mxu1 }
 0x17b   : > { %v1051_v39 = vadd.f32 %v1050_v34, %v961_v31 }
 0x17c   : > { %v1226_v35 = vadd.f32 %v1225_v28, %v1137_v30 }
 0x17e   : > { %v1369_v32 = vmul.f32 %v1995_v11, %v1226_v35 }
 0x180   : > { %v1749_v37 = vpack.c.bf16 %v1369_v32, %v1368_v36 }
 0x181   : > { %v1139_v33 = vpop.f32.mrf.mxu2  ;;  %v963_v40 = vpop.f32.mrf.mxu0 }
 0x182   : > { %v1228_v38 = vpop.f32.mrf.mxu3  ;;  %1777 = vst [vmem:[%s2011_s19 + $0x60] sm:$0xff] %v1749_v37   ;;  %v1052_v41 = vpop.f32.mrf.mxu1  ;;  %v1140_v42 = vadd.f32 %v1139_v33, %v1051_v39 }
 0x183   : > { %v1053_v43 = vadd.f32 %v1052_v41, %v963_v40 }
 0x184   : > { %v1229_v46 = vadd.f32 %v1228_v38, %v1140_v42 }
 0x186   : > { %v1370_v53 = vmul.f32 %v1995_v11, %v1229_v46 }
 0x189   : > { %v1141_v44 = vpop.f32.mrf.mxu2  ;;  %v966_v50 = vpop.f32.mrf.mxu0 }
 0x18a   : > { %v1230_v45 = vpop.f32.mrf.mxu3  ;;  %v1142_v49 = vadd.f32 %v1141_v44, %v1053_v43  ;;  %v1055_v51 = vpop.f32.mrf.mxu1 }
 0x18b   : > { %v1056_v56 = vadd.f32 %v1055_v51, %v966_v50 }
 0x18c   : > { %v1231_v52 = vadd.f32 %v1230_v45, %v1142_v49 }
 0x18e   : > { %v1371_v47 = vmul.f32 %v1995_v11, %v1231_v52 }
 0x190   : > { %v1754_v54 = vpack.c.bf16 %v1371_v47, %v1370_v53 }
 0x191   : > { %v1144_v55 = vpop.f32.mrf.mxu2  ;;  %v968_v57 = vpop.f32.mrf.mxu0 }
 0x192   : > { %v1233_v48 = vpop.f32.mrf.mxu3  ;;  %1778 = vst [vmem:[%s2011_s19 + $0x68] sm:$0xff] %v1754_v54   ;;  %v1057_v58 = vpop.f32.mrf.mxu1  ;;  %v1145_v59 = vadd.f32 %v1144_v55, %v1056_v56 }
 0x193   : > { %v1058_v60 = vadd.f32 %v1057_v58, %v968_v57 }
 0x194   : > { %v1234_v63 = vadd.f32 %v1233_v48, %v1145_v59 }
 0x196   : > { %v1372_v4 = vmul.f32 %v1995_v11, %v1234_v63 }
 0x199   : > { %v1146_v61 = vpop.f32.mrf.mxu2  ;;  %v971_v1 = vpop.f32.mrf.mxu0 }
 0x19a   : > { %v1235_v62 = vpop.f32.mrf.mxu3  ;;  %v1147_v0 = vadd.f32 %v1146_v61, %v1058_v60  ;;  %v1060_v2 = vpop.f32.mrf.mxu1 }
 0x19b   : > { %v1061_v9 = vadd.f32 %v1060_v2, %v971_v1 }
 0x19c   : > { %v1236_v3 = vadd.f32 %v1235_v62, %v1147_v0 }
 0x19e   : > { %v1373_v5 = vmul.f32 %v1995_v11, %v1236_v3 }
 0x1a0   : > { %v1759_v6 = vpack.c.bf16 %v1373_v5, %v1372_v4 }
 0x1a1   : > { %v1149_v7 = vpop.f32.mrf.mxu2  ;;  %v973_v10 = vpop.f32.mrf.mxu0 }
 0x1a2   : > { %v1238_v8 = vpop.f32.mrf.mxu3  ;;  %1779 = vst [vmem:[%s2011_s19 + $0x70] sm:$0xff] %v1759_v6   ;;  %v1062_v12 = vpop.f32.mrf.mxu1  ;;  %v1150_v13 = vadd.f32 %v1149_v7, %v1061_v9 }
 0x1a3   : > { %v1063_v14 = vadd.f32 %v1062_v12, %v973_v10 }
 0x1a4   : > { %v1239_v16 = vadd.f32 %v1238_v8, %v1150_v13 }
 0x1a6   : > { %v1374_v17 = vmul.f32 %v1995_v11, %v1239_v16 }
 0x1a9   : > { %v1151_v15 = vpop.f32.mrf.mxu2 }
 0x1aa   : > { %v1152_v19 = vadd.f32 %v1151_v15, %v1063_v14  ;;  %v1240_v20 = vpop.f32.mrf.mxu3 }
 0x1ac   : > { %v1241_v21 = vadd.f32 %v1240_v20, %v1152_v19 }
 0x1ae   : > { %v1375_v22 = vmul.f32 %v1995_v11, %v1241_v21 }
 0x1b0   : > { %v1764_v18 = vpack.c.bf16 %v1375_v22, %v1374_v17 }
 0x1b2   : > { %1780 = vst [vmem:[%s2011_s19 + $0x78] sm:$0xff] %v1764_v18  }
 0x1b3 PF: > { %s14_s16 = sadd.s32 1, %s1827_s16   ;;  %s2147_s14 = smov %s1823_s15 }
 0x1b4   : > { %p11_p6 = scmp.ge.s32.totalorder %s14_s16, 4   ;;  %s2148_s15 = smov %s2150_s0 }
 0x1b6   :  { %13 = sbr.rel (!%p11_p6) target bundleno = 2 (0x2), region = 71 }

</bundles_post_ra>
